<compile_context>
chip_gen: v7x
topology: tpu7x:2x2x1
jax: 0.10.0
libtpu: 0.0.40
codegen_flags: <defaults>
</compile_context>

<pallas_src>
import functools

import jax
import jax.numpy as jnp
from jax.experimental import pallas as pl
from jax.experimental.pallas import tpu as pltpu


_LPAD = 2  # column where real data starts inside the padded scratch (even -> aligned stores)


def _round_up(x, m):
    return ((x + m - 1) // m) * m


def _vmem_limit_bytes():
    # v7x: 64 MiB / TensorCore; v5e/v6e: 128 MiB.  Use ~3/4 of physical, <=100 MiB.
    cap = 64 * 1024 * 1024
    try:
        info = pltpu.get_tpu_info()
        cap = int(getattr(info, "vmem_capacity_bytes", cap) or cap)
    except Exception:
        pass
    return int(min(cap * 3 // 4, 100 * 1024 * 1024))


def _compiler_params():
    return pltpu.CompilerParams(
        dimension_semantics=("parallel",),          # batch axis across TCs
        vmem_limit_bytes=_vmem_limit_bytes(),
    )


# ----------------------------------------------------------------------------
# In-kernel helpers
# ----------------------------------------------------------------------------
def _zero_halo(pad_ref, H, W):
    """Zero only the halo cells the 3x3 taps read: rows 0 / H+1 (full width)
    and columns _LPAD-1 / _LPAD+W.  Columns beyond _LPAD+W are never read."""
    Wp = pad_ref.shape[1]
    C = pad_ref.shape[2]
    zr = jnp.zeros((1, Wp, C), pad_ref.dtype)
    pad_ref[0:1, :, :] = zr
    pad_ref[H + 1:H + 2, :, :] = zr
    zc = jnp.zeros((H + 2, 1, C), pad_ref.dtype)
    pad_ref[:, _LPAD - 1:_LPAD, :] = zc                 # left halo column
    pad_ref[:, _LPAD + W:_LPAD + W + 1, :] = zc         # right halo column


def _conv3x3_accum(pad_ref, w_ref, *, H, W, cout):
    """3x3 conv (stride 1, zero pad 1) as 9 accumulating MXU matmuls over
    shifted windows of the padded scratch.  Only f32 intermediate is the
    (H*W, cout) accumulator (accumulation chain is MRB-friendly on v7x).

    pad_ref : (H+2, Wp, Cin) bf16; halo zeroed, data at rows [1,H+1),
              cols [_LPAD, _LPAD+W).
    w_ref   : (9, Cin, Cout) bf16; tap k = dy*3+dx.
    """
    cin = pad_ref.shape[-1]
    acc = jnp.zeros((H * W, cout), jnp.float32)
    for dy in range(3):
        for dx in range(3):
            c0 = _LPAD - 1 + dx
            win = pad_ref[dy:dy + H, c0:c0 + W, :]       # (H, W, Cin) bf16
            acc = acc + jnp.dot(win.reshape(H * W, cin), w_ref[dy * 3 + dx],
                                preferred_element_type=jnp.float32)
    return acc                                           # (H*W, Cout) f32


def _fpn_body(x_ref, skip_ref, wl_ref, bl_ref, wo_ref, bo_ref, pad_ref,
              *, H, W, fuse_up):
    """lateral 1x1 + bias + (optionally in-kernel 2x-nearest upsampled) skip
    add, then 3x3 output conv + bias + ReLU.  Returns y (H, W, C) float32.
    Leaves the pad scratch halo zeroed for reuse by a follow-up 3x3."""
    cin = x_ref.shape[-1]
    C = bl_ref.shape[-1]
    lat = jnp.dot(x_ref[...].reshape(H * W, cin), wl_ref[...],
                  preferred_element_type=jnp.float32)        # (H*W, C)
    lat = lat + bl_ref[...].reshape(1, C)
    if fuse_up:
        Hc, Wc = skip_ref.shape[0], skip_ref.shape[1]
        yc = skip_ref[...].astype(jnp.float32)               # (Hc, Wc, C)
        rows = jnp.broadcast_to(yc[:, None, :, :], (Hc, 2, Wc, C)).reshape(H, Wc, C)
        up = jnp.broadcast_to(rows[:, :, None, :], (H, Wc, 2, C)).reshape(H * W, C)
    else:
        up = skip_ref[...].astype(jnp.float32).reshape(H * W, C)
    cur = lat + up
    _zero_halo(pad_ref, H, W)
    pad_ref[1:H + 1, _LPAD:_LPAD + W, :] = cur.reshape(H, W, C).astype(pad_ref.dtype)
    acc = _conv3x3_accum(pad_ref, wo_ref, H=H, W=W, cout=C)
    return jnp.maximum(acc.reshape(H, W, C) + bo_ref[...], 0.0)


# ----------------------------------------------------------------------------
# Pallas kernels
# ----------------------------------------------------------------------------
def _output_conv_kernel(x_ref, w_ref, b_ref, o_ref, pad_ref, *, H, W, relu):
    """3x3 conv + bias (+ ReLU) for one image (coarsest level / fallbacks)."""
    cout = o_ref.shape[-1]
    _zero_halo(pad_ref, H, W)
    pad_ref[1:H + 1, _LPAD:_LPAD + W, :] = x_ref[...]
    acc = _conv3x3_accum(pad_ref, w_ref, H=H, W=W, cout=cout)
    acc = acc.reshape(H, W, cout) + b_ref[...]
    if relu:
        acc = jnp.maximum(acc, 0.0)
    o_ref[...] = acc.astype(o_ref.dtype)


def _fpn_fuse_kernel(x_ref, skip_ref, wl_ref, bl_ref, wo_ref, bo_ref,
                     o_ref, pad_ref, *, H, W, fuse_up):
    """Fused FPN level (intermediate): lateral + upsampled skip + 3x3 + ReLU."""
    y = _fpn_body(x_ref, skip_ref, wl_ref, bl_ref, wo_ref, bo_ref, pad_ref,
                  H=H, W=W, fuse_up=fuse_up)
    o_ref[...] = y.astype(o_ref.dtype)


def _fpn_fuse_mask_kernel(x_ref, skip_ref, wl_ref, bl_ref, wo_ref, bo_ref,
                          wm_ref, bm_ref, om_ref, pad_ref, *, H, W, fuse_up):
    """Finest FPN level with the mask_features 3x3 conv fused in; only the
    mask map is written to HBM (y never leaves VMEM)."""
    y = _fpn_body(x_ref, skip_ref, wl_ref, bl_ref, wo_ref, bo_ref, pad_ref,
                  H=H, W=W, fuse_up=fuse_up)
    mdim = om_ref.shape[-1]
    # Reuse the padded scratch (halo already zeroed) for the mask conv input.
    pad_ref[1:H + 1, _LPAD:_LPAD + W, :] = y.astype(pad_ref.dtype)
    acc = _conv3x3_accum(pad_ref, wm_ref, H=H, W=W, cout=mdim)
    om_ref[...] = (acc.reshape(H, W, mdim) + bm_ref[...]).astype(om_ref.dtype)


# ----------------------------------------------------------------------------
# Wrappers around pallas_call
# ----------------------------------------------------------------------------
def _prep_conv3x3_weights(w):
    """(3,3,Cin,Cout) HWIO -> (9, Cin, Cout) bf16; tap k = dy*3+dx."""
    kh, kw, cin, cout = w.shape
    return w.reshape(kh * kw, cin, cout).astype(jnp.bfloat16)


def output_conv3x3(x_nhwc, w, b, *, relu, out_dtype):
    """x: (N,H,W,Cin), w: (3,3,Cin,Cout), b: (Cout,) -> (N,H,W,Cout)."""
    N, H, W, Cin = x_nhwc.shape
    Cout = w.shape[-1]
    Wp = _round_up(W + 3, 8)
    kernel = functools.partial(_output_conv_kernel, H=H, W=W, relu=relu)
    flops = 2 * N * H * W * 9 * Cin * Cout
    bytes_accessed = int(N * H * W * Cin * 2 + N * H * W * Cout *
                         jnp.dtype(out_dtype).itemsize + 9 * Cin * Cout * 2)
    return pl.pallas_call(
        kernel,
        out_shape=jax.ShapeDtypeStruct((N, H, W, Cout), out_dtype),
        grid=(N,),
        in_specs=[
            pl.BlockSpec((None, H, W, Cin), lambda n: (n, 0, 0, 0)),
            pl.BlockSpec((9, Cin, Cout), lambda n: (0, 0, 0)),
            pl.BlockSpec((1, 1, Cout), lambda n: (0, 0, 0)),
        ],
        out_specs=pl.BlockSpec((None, H, W, Cout), lambda n: (n, 0, 0, 0)),
        scratch_shapes=[pltpu.VMEM((H + 2, Wp, Cin), jnp.bfloat16)],
        compiler_params=_compiler_params(),
        cost_estimate=pl.CostEstimate(flops=int(flops), transcendentals=0,
                                      bytes_accessed=bytes_accessed),
    )(x_nhwc.astype(jnp.bfloat16),
      _prep_conv3x3_weights(w),
      b.reshape(1, 1, Cout).astype(jnp.float32))


def fpn_fuse_level(x_nhwc, y_coarse_nhwc, wl, bl, wo, bo, *, mask_w=None, mask_b=None):
    """One FPN level: lateral 1x1 + bias, + nearest-upsampled top-down skip,
    3x3 output conv + bias + ReLU.  If mask_w is given (finest level) the final
    mask_features 3x3 conv is fused in and the mask map is returned instead."""
    N, H, W, Cin = x_nhwc.shape
    C = wl.shape[-1]
    _, Hc, Wc, _ = y_coarse_nhwc.shape
    fuse_up = (H == 2 * Hc) and (W == 2 * Wc)
    if not fuse_up:
        # general-size nearest interpolation (rare path) done in the wrapper
        hi = (jnp.arange(H) * Hc // H).astype(jnp.int32)
        wi = (jnp.arange(W) * Wc // W).astype(jnp.int32)
        y_coarse_nhwc = y_coarse_nhwc[:, hi][:, :, wi]
        Hs, Ws = H, W
    else:
        Hs, Ws = Hc, Wc
    Wp = _round_up(W + 3, 8)

    in_specs = [
        pl.BlockSpec((None, H, W, Cin), lambda n: (n, 0, 0, 0)),
        pl.BlockSpec((None, Hs, Ws, C), lambda n: (n, 0, 0, 0)),
        pl.BlockSpec((Cin, C), lambda n: (0, 0)),
        pl.BlockSpec((1, 1, C), lambda n: (0, 0, 0)),
        pl.BlockSpec((9, C, C), lambda n: (0, 0, 0)),
        pl.BlockSpec((1, 1, C), lambda n: (0, 0, 0)),
    ]
    args = [x_nhwc.astype(jnp.bfloat16),
            y_coarse_nhwc.astype(jnp.bfloat16),
            wl.astype(jnp.bfloat16),
            bl.reshape(1, 1, C).astype(jnp.float32),
            _prep_conv3x3_weights(wo),
            bo.reshape(1, 1, C).astype(jnp.float32)]
    flops = 2 * N * H * W * (Cin * C + 9 * C * C)
    bytes_accessed = N * (H * W * Cin + Hs * Ws * C) * 2

    if mask_w is None:
        kernel = functools.partial(_fpn_fuse_kernel, H=H, W=W, fuse_up=fuse_up)
        out_shape = jax.ShapeDtypeStruct((N, H, W, C), jnp.bfloat16)
        out_specs = pl.BlockSpec((None, H, W, C), lambda n: (n, 0, 0, 0))
        bytes_accessed += N * H * W * C * 2
    else:
        Mdim = mask_w.shape[-1]
        kernel = functools.partial(_fpn_fuse_mask_kernel, H=H, W=W, fuse_up=fuse_up)
        out_shape = jax.ShapeDtypeStruct((N, H, W, Mdim), jnp.float32)
        out_specs = pl.BlockSpec((None, H, W, Mdim), lambda n: (n, 0, 0, 0))
        in_specs += [pl.BlockSpec((9, C, Mdim), lambda n: (0, 0, 0)),
                     pl.BlockSpec((1, 1, Mdim), lambda n: (0, 0, 0))]
        args += [_prep_conv3x3_weights(mask_w),
                 mask_b.reshape(1, 1, Mdim).astype(jnp.float32)]
        flops += 2 * N * H * W * 9 * C * Mdim
        bytes_accessed += N * H * W * Mdim * 4

    return pl.pallas_call(
        kernel,
        out_shape=out_shape,
        grid=(N,),
        in_specs=in_specs,
        out_specs=out_specs,
        scratch_shapes=[pltpu.VMEM((H + 2, Wp, C), jnp.bfloat16)],
        compiler_params=_compiler_params(),
        cost_estimate=pl.CostEstimate(flops=int(flops), transcendentals=0,
                                      bytes_accessed=int(bytes_accessed)),
    )(*args)


# ----------------------------------------------------------------------------
# Parameter construction (deterministic, synthetic — no checkpoint loading)
# ----------------------------------------------------------------------------
def init_params(key, feature_specs, conv_dim, mask_dim):
    """feature_specs: list of (name, channels, stride), any order."""
    specs = sorted(feature_specs, key=lambda t: t[2])         # ascending stride
    in_features = [name for name, _, _ in specs]
    params = {"in_features": in_features}
    n = len(specs)
    for idx, (name, in_ch, _) in enumerate(specs):
        if idx == n - 1:                                      # coarsest level
            key, k1, k2 = jax.random.split(key, 3)
            params[f"layer_{idx+1}_w"] = 0.05 * jax.random.normal(
                k1, (3, 3, in_ch, conv_dim), jnp.float32)
            params[f"layer_{idx+1}_b"] = 0.01 * jax.random.normal(
                k2, (conv_dim,), jnp.float32)
        else:
            key, k1, k2, k3, k4 = jax.random.split(key, 5)
            params[f"adapter_{idx+1}_w"] = 0.05 * jax.random.normal(
                k1, (in_ch, conv_dim), jnp.float32)
            params[f"adapter_{idx+1}_b"] = 0.01 * jax.random.normal(
                k2, (conv_dim,), jnp.float32)
            params[f"layer_{idx+1}_w"] = 0.05 * jax.random.normal(
                k3, (3, 3, conv_dim, conv_dim), jnp.float32)
            params[f"layer_{idx+1}_b"] = 0.01 * jax.random.normal(
                k4, (conv_dim,), jnp.float32)
    key, k1, k2 = jax.random.split(key, 3)
    params["mask_w"] = 0.05 * jax.random.normal(
        k1, (3, 3, conv_dim, mask_dim), jnp.float32)
    params["mask_b"] = 0.01 * jax.random.normal(k2, (mask_dim,), jnp.float32)
    return params


# ----------------------------------------------------------------------------
# forward_features (mirrors BasePixelDecoder.forward_features)
# ----------------------------------------------------------------------------
def forward_features_nhwc(features_nhwc, params):
    """features_nhwc: dict name -> (N,H,W,C).  Returns (mask_features NHWC, None)."""
    in_features = params["in_features"]                       # ascending stride
    n = len(in_features)
    y = None
    for ridx, name in enumerate(in_features[::-1]):           # coarse -> fine
        idx = n - 1 - ridx
        x = features_nhwc[name]
        if ridx == 0:                                         # no lateral conv
            y = output_conv3x3(x, params[f"layer_{idx+1}_w"],
                               params[f"layer_{idx+1}_b"],
                               relu=True, out_dtype=jnp.bfloat16)
        else:
            is_finest = (ridx == n - 1)
            y = fpn_fuse_level(
                x, y,
                params[f"adapter_{idx+1}_w"], params[f"adapter_{idx+1}_b"],
                params[f"layer_{idx+1}_w"], params[f"layer_{idx+1}_b"],
                mask_w=params["mask_w"] if is_finest else None,
                mask_b=params["mask_b"] if is_finest else None)
    if n == 1:                                                # single-level fallback
        y = output_conv3x3(y, params["mask_w"], params["mask_b"],
                           relu=False, out_dtype=jnp.float32)
    return y, None


def forward_features(features_nchw, params):
    """PyTorch-style NCHW interface (transposes are XLA glue; prefer NHWC entry)."""
    feats = {k: jnp.transpose(v, (0, 2, 3, 1)) for k, v in features_nchw.items()}
    mask, extra = forward_features_nhwc(feats, params)
    return jnp.transpose(mask, (0, 3, 1, 2)), extra


# ----------------------------------------------------------------------------
if __name__ == "__main__":
    key = jax.random.PRNGKey(0)
    N, conv_dim, mask_dim = 2, 32, 16
    # (name, channels, stride) — spatial size = 128 / stride for this demo
    feature_specs = [("res3", 8, 8), ("res4", 16, 16), ("res5", 32, 32)]
    spatial = {"res3": 16, "res4": 8, "res5": 4}

    key, pkey = jax.random.split(key)
    params = init_params(pkey, feature_specs, conv_dim, mask_dim)

    features = {}
    for name, ch, _ in feature_specs:
        key, fk = jax.random.split(key)
        s = spatial[name]
        features[name] = jax.random.normal(fk, (N, ch, s, s), jnp.float32)

    mask_feats, transformer_feats = forward_features(features, params)
    mask_feats = jax.block_until_ready(mask_feats)

    expected = (N, mask_dim, spatial["res3"], spatial["res3"])
    assert mask_feats.shape == expected, (mask_feats.shape, expected)
    assert transformer_feats is None
    assert bool(jnp.all(jnp.isfinite(mask_feats)))
    print("KERNEL_OK")
</pallas_src>

<mosaic_0001>
module attributes {stable_mosaic.version = 11 : i64} {
  func.func @_output_conv_kernel(%arg0: i32, %arg1: memref<1x4x4x32xbf16, #tpu.memory_space<vmem>>, %arg2: memref<9x32x32xbf16, #tpu.memory_space<vmem>>, %arg3: memref<1x1x32xf32, #tpu.memory_space<vmem>>, %arg4: memref<1x4x4x32xbf16, #tpu.memory_space<vmem>>, %arg5: memref<6x8x32xbf16, #tpu.memory_space<vmem>>) attributes {dimension_semantics = [#tpu.dimension_semantics<parallel>], iteration_bounds = array<i64: 2>, scalar_prefetch = 0 : i64, scratch_operands = 1 : i64, tpu.core_type = #tpu.core_type<tc>, window_params = [{transform_indices = @transform_0, window_bounds = array<i64: 1, 4, 4, 32>}, {pipeline_mode = #tpu.pipeline_mode<synchronous>, transform_indices = @transform_1, window_bounds = array<i64: 9, 32, 32>}, {pipeline_mode = #tpu.pipeline_mode<synchronous>, transform_indices = @transform_2, window_bounds = array<i64: 1, 1, 32>}, {transform_indices = @transform_3, window_bounds = array<i64: 1, 4, 4, 32>}]} {
    %cst = arith.constant 0.000000e+00 : bf16
    %0 = vector.broadcast %cst : bf16 to vector<1x8x32xbf16>
    %c0 = arith.constant 0 : index
    %c0_0 = arith.constant 0 : index
    %c0_1 = arith.constant 0 : index
    %1 = vector.load %arg5[%c0, %c0_0, %c0_1] : memref<6x8x32xbf16, #tpu.memory_space<vmem>>, vector<1x8x32xbf16>
    tpu.vector_store %arg5[%c0, %c0_0, %c0_1], %0 {strides = array<i32>} : memref<6x8x32xbf16, #tpu.memory_space<vmem>>, vector<1x8x32xbf16>,
    %c5 = arith.constant 5 : index
    %c0_2 = arith.constant 0 : index
    %c0_3 = arith.constant 0 : index
    %2 = vector.load %arg5[%c5, %c0_2, %c0_3] : memref<6x8x32xbf16, #tpu.memory_space<vmem>>, vector<1x8x32xbf16>
    tpu.vector_store %arg5[%c5, %c0_2, %c0_3], %0 {strides = array<i32>} : memref<6x8x32xbf16, #tpu.memory_space<vmem>>, vector<1x8x32xbf16>,
    %cst_4 = arith.constant 0.000000e+00 : bf16
    %3 = vector.broadcast %cst_4 : bf16 to vector<6x1x32xbf16>
    %c0_5 = arith.constant 0 : index
    %c1 = arith.constant 1 : index
    %c0_6 = arith.constant 0 : index
    %4 = vector.load %arg5[%c0_5, %c1, %c0_6] : memref<6x8x32xbf16, #tpu.memory_space<vmem>>, vector<6x1x32xbf16>
    tpu.vector_store %arg5[%c0_5, %c1, %c0_6], %3 {strides = array<i32>} : memref<6x8x32xbf16, #tpu.memory_space<vmem>>, vector<6x1x32xbf16>,
    %c0_7 = arith.constant 0 : index
    %c6 = arith.constant 6 : index
    %c0_8 = arith.constant 0 : index
    %5 = vector.load %arg5[%c0_7, %c6, %c0_8] : memref<6x8x32xbf16, #tpu.memory_space<vmem>>, vector<6x1x32xbf16>
    tpu.vector_store %arg5[%c0_7, %c6, %c0_8], %3 {strides = array<i32>} : memref<6x8x32xbf16, #tpu.memory_space<vmem>>, vector<6x1x32xbf16>,
    %c0_9 = arith.constant 0 : index
    %c0_10 = arith.constant 0 : index
    %c0_11 = arith.constant 0 : index
    %c0_12 = arith.constant 0 : index
    %6 = vector.load %arg1[%c0_9, %c0_10, %c0_11, %c0_12] : memref<1x4x4x32xbf16, #tpu.memory_space<vmem>>, vector<1x4x4x32xbf16>
    %7 = vector.shape_cast %6 : vector<1x4x4x32xbf16> to vector<4x4x32xbf16>
    %c1_13 = arith.constant 1 : index
    %c2 = arith.constant 2 : index
    %c0_14 = arith.constant 0 : index
    %8 = vector.load %arg5[%c1_13, %c2, %c0_14] : memref<6x8x32xbf16, #tpu.memory_space<vmem>>, vector<4x4x32xbf16>
    tpu.vector_store %arg5[%c1_13, %c2, %c0_14], %7 {strides = array<i32>} : memref<6x8x32xbf16, #tpu.memory_space<vmem>>, vector<4x4x32xbf16>,
    %cst_15 = arith.constant 0.000000e+00 : f32
    %9 = vector.broadcast %cst_15 : f32 to vector<16x32xf32>
    %c0_16 = arith.constant 0 : index
    %c1_17 = arith.constant 1 : index
    %c0_18 = arith.constant 0 : index
    %10 = vector.load %arg5[%c0_16, %c1_17, %c0_18] : memref<6x8x32xbf16, #tpu.memory_space<vmem>>, vector<4x4x32xbf16>
    %11 = vector.shape_cast %10 : vector<4x4x32xbf16> to vector<16x32xbf16>
    %c0_19 = arith.constant 0 : index
    %c0_20 = arith.constant 0 : index
    %c0_21 = arith.constant 0 : index
    %12 = vector.load %arg2[%c0_19, %c0_20, %c0_21] : memref<9x32x32xbf16, #tpu.memory_space<vmem>>, vector<1x32x32xbf16>
    %13 = vector.shape_cast %12 : vector<1x32x32xbf16> to vector<32x32xbf16>
    %cst_22 = arith.constant dense<0.000000e+00> : vector<16x32xf32>
    %14 = tpu.matmul %11, %13, %cst_22 {dimension_numbers = #tpu.dot_dimension_numbers<[1], [0], [0], [1], [0, 0, 1, 1], [], []>} : vector<16x32xbf16>, vector<32x32xbf16>, vector<16x32xf32> -> vector<16x32xf32>
    %15 = arith.addf %9, %14 : vector<16x32xf32>
    %c0_23 = arith.constant 0 : index
    %c2_24 = arith.constant 2 : index
    %c0_25 = arith.constant 0 : index
    %16 = vector.load %arg5[%c0_23, %c2_24, %c0_25] : memref<6x8x32xbf16, #tpu.memory_space<vmem>>, vector<4x4x32xbf16>
    %17 = vector.shape_cast %16 : vector<4x4x32xbf16> to vector<16x32xbf16>
    %c1_26 = arith.constant 1 : index
    %c0_27 = arith.constant 0 : index
    %c0_28 = arith.constant 0 : index
    %18 = vector.load %arg2[%c1_26, %c0_27, %c0_28] : memref<9x32x32xbf16, #tpu.memory_space<vmem>>, vector<1x32x32xbf16>
    %19 = vector.shape_cast %18 : vector<1x32x32xbf16> to vector<32x32xbf16>
    %cst_29 = arith.constant dense<0.000000e+00> : vector<16x32xf32>
    %20 = tpu.matmul %17, %19, %cst_29 {dimension_numbers = #tpu.dot_dimension_numbers<[1], [0], [0], [1], [0, 0, 1, 1], [], []>} : vector<16x32xbf16>, vector<32x32xbf16>, vector<16x32xf32> -> vector<16x32xf32>
    %21 = arith.addf %15, %20 : vector<16x32xf32>
    %c0_30 = arith.constant 0 : index
    %c3 = arith.constant 3 : index
    %c0_31 = arith.constant 0 : index
    %22 = vector.load %arg5[%c0_30, %c3, %c0_31] : memref<6x8x32xbf16, #tpu.memory_space<vmem>>, vector<4x4x32xbf16>
    %23 = vector.shape_cast %22 : vector<4x4x32xbf16> to vector<16x32xbf16>
    %c2_32 = arith.constant 2 : index
    %c0_33 = arith.constant 0 : index
    %c0_34 = arith.constant 0 : index
    %24 = vector.load %arg2[%c2_32, %c0_33, %c0_34] : memref<9x32x32xbf16, #tpu.memory_space<vmem>>, vector<1x32x32xbf16>
    %25 = vector.shape_cast %24 : vector<1x32x32xbf16> to vector<32x32xbf16>
    %cst_35 = arith.constant dense<0.000000e+00> : vector<16x32xf32>
    %26 = tpu.matmul %23, %25, %cst_35 {dimension_numbers = #tpu.dot_dimension_numbers<[1], [0], [0], [1], [0, 0, 1, 1], [], []>} : vector<16x32xbf16>, vector<32x32xbf16>, vector<16x32xf32> -> vector<16x32xf32>
    %27 = arith.addf %21, %26 : vector<16x32xf32>
    %c1_36 = arith.constant 1 : index
    %c1_37 = arith.constant 1 : index
    %c0_38 = arith.constant 0 : index
    %28 = vector.load %arg5[%c1_36, %c1_37, %c0_38] : memref<6x8x32xbf16, #tpu.memory_space<vmem>>, vector<4x4x32xbf16>
    %29 = vector.shape_cast %28 : vector<4x4x32xbf16> to vector<16x32xbf16>
    %c3_39 = arith.constant 3 : index
    %c0_40 = arith.constant 0 : index
    %c0_41 = arith.constant 0 : index
    %30 = vector.load %arg2[%c3_39, %c0_40, %c0_41] : memref<9x32x32xbf16, #tpu.memory_space<vmem>>, vector<1x32x32xbf16>
    %31 = vector.shape_cast %30 : vector<1x32x32xbf16> to vector<32x32xbf16>
    %cst_42 = arith.constant dense<0.000000e+00> : vector<16x32xf32>
    %32 = tpu.matmul %29, %31, %cst_42 {dimension_numbers = #tpu.dot_dimension_numbers<[1], [0], [0], [1], [0, 0, 1, 1], [], []>} : vector<16x32xbf16>, vector<32x32xbf16>, vector<16x32xf32> -> vector<16x32xf32>
    %33 = arith.addf %27, %32 : vector<16x32xf32>
    %c1_43 = arith.constant 1 : index
    %c2_44 = arith.constant 2 : index
    %c0_45 = arith.constant 0 : index
    %34 = vector.load %arg5[%c1_43, %c2_44, %c0_45] : memref<6x8x32xbf16, #tpu.memory_space<vmem>>, vector<4x4x32xbf16>
    %35 = vector.shape_cast %34 : vector<4x4x32xbf16> to vector<16x32xbf16>
    %c4 = arith.constant 4 : index
    %c0_46 = arith.constant 0 : index
    %c0_47 = arith.constant 0 : index
    %36 = vector.load %arg2[%c4, %c0_46, %c0_47] : memref<9x32x32xbf16, #tpu.memory_space<vmem>>, vector<1x32x32xbf16>
    %37 = vector.shape_cast %36 : vector<1x32x32xbf16> to vector<32x32xbf16>
    %cst_48 = arith.constant dense<0.000000e+00> : vector<16x32xf32>
    %38 = tpu.matmul %35, %37, %cst_48 {dimension_numbers = #tpu.dot_dimension_numbers<[1], [0], [0], [1], [0, 0, 1, 1], [], []>} : vector<16x32xbf16>, vector<32x32xbf16>, vector<16x32xf32> -> vector<16x32xf32>
    %39 = arith.addf %33, %38 : vector<16x32xf32>
    %c1_49 = arith.constant 1 : index
    %c3_50 = arith.constant 3 : index
    %c0_51 = arith.constant 0 : index
    %40 = vector.load %arg5[%c1_49, %c3_50, %c0_51] : memref<6x8x32xbf16, #tpu.memory_space<vmem>>, vector<4x4x32xbf16>
    %41 = vector.shape_cast %40 : vector<4x4x32xbf16> to vector<16x32xbf16>
    %c5_52 = arith.constant 5 : index
    %c0_53 = arith.constant 0 : index
    %c0_54 = arith.constant 0 : index
    %42 = vector.load %arg2[%c5_52, %c0_53, %c0_54] : memref<9x32x32xbf16, #tpu.memory_space<vmem>>, vector<1x32x32xbf16>
    %43 = vector.shape_cast %42 : vector<1x32x32xbf16> to vector<32x32xbf16>
    %cst_55 = arith.constant dense<0.000000e+00> : vector<16x32xf32>
    %44 = tpu.matmul %41, %43, %cst_55 {dimension_numbers = #tpu.dot_dimension_numbers<[1], [0], [0], [1], [0, 0, 1, 1], [], []>} : vector<16x32xbf16>, vector<32x32xbf16>, vector<16x32xf32> -> vector<16x32xf32>
    %45 = arith.addf %39, %44 : vector<16x32xf32>
    %c2_56 = arith.constant 2 : index
    %c1_57 = arith.constant 1 : index
    %c0_58 = arith.constant 0 : index
    %46 = vector.load %arg5[%c2_56, %c1_57, %c0_58] : memref<6x8x32xbf16, #tpu.memory_space<vmem>>, vector<4x4x32xbf16>
    %47 = vector.shape_cast %46 : vector<4x4x32xbf16> to vector<16x32xbf16>
    %c6_59 = arith.constant 6 : index
    %c0_60 = arith.constant 0 : index
    %c0_61 = arith.constant 0 : index
    %48 = vector.load %arg2[%c6_59, %c0_60, %c0_61] : memref<9x32x32xbf16, #tpu.memory_space<vmem>>, vector<1x32x32xbf16>
    %49 = vector.shape_cast %48 : vector<1x32x32xbf16> to vector<32x32xbf16>
    %cst_62 = arith.constant dense<0.000000e+00> : vector<16x32xf32>
    %50 = tpu.matmul %47, %49, %cst_62 {dimension_numbers = #tpu.dot_dimension_numbers<[1], [0], [0], [1], [0, 0, 1, 1], [], []>} : vector<16x32xbf16>, vector<32x32xbf16>, vector<16x32xf32> -> vector<16x32xf32>
    %51 = arith.addf %45, %50 : vector<16x32xf32>
    %c2_63 = arith.constant 2 : index
    %c2_64 = arith.constant 2 : index
    %c0_65 = arith.constant 0 : index
    %52 = vector.load %arg5[%c2_63, %c2_64, %c0_65] : memref<6x8x32xbf16, #tpu.memory_space<vmem>>, vector<4x4x32xbf16>
    %53 = vector.shape_cast %52 : vector<4x4x32xbf16> to vector<16x32xbf16>
    %c7 = arith.constant 7 : index
    %c0_66 = arith.constant 0 : index
    %c0_67 = arith.constant 0 : index
    %54 = vector.load %arg2[%c7, %c0_66, %c0_67] : memref<9x32x32xbf16, #tpu.memory_space<vmem>>, vector<1x32x32xbf16>
    %55 = vector.shape_cast %54 : vector<1x32x32xbf16> to vector<32x32xbf16>
    %cst_68 = arith.constant dense<0.000000e+00> : vector<16x32xf32>
    %56 = tpu.matmul %53, %55, %cst_68 {dimension_numbers = #tpu.dot_dimension_numbers<[1], [0], [0], [1], [0, 0, 1, 1], [], []>} : vector<16x32xbf16>, vector<32x32xbf16>, vector<16x32xf32> -> vector<16x32xf32>
    %57 = arith.addf %51, %56 : vector<16x32xf32>
    %c2_69 = arith.constant 2 : index
    %c3_70 = arith.constant 3 : index
    %c0_71 = arith.constant 0 : index
    %58 = vector.load %arg5[%c2_69, %c3_70, %c0_71] : memref<6x8x32xbf16, #tpu.memory_space<vmem>>, vector<4x4x32xbf16>
    %59 = vector.shape_cast %58 : vector<4x4x32xbf16> to vector<16x32xbf16>
    %c8 = arith.constant 8 : index
    %c0_72 = arith.constant 0 : index
    %c0_73 = arith.constant 0 : index
    %60 = vector.load %arg2[%c8, %c0_72, %c0_73] : memref<9x32x32xbf16, #tpu.memory_space<vmem>>, vector<1x32x32xbf16>
    %61 = vector.shape_cast %60 : vector<1x32x32xbf16> to vector<32x32xbf16>
    %cst_74 = arith.constant dense<0.000000e+00> : vector<16x32xf32>
    %62 = tpu.matmul %59, %61, %cst_74 {dimension_numbers = #tpu.dot_dimension_numbers<[1], [0], [0], [1], [0, 0, 1, 1], [], []>} : vector<16x32xbf16>, vector<32x32xbf16>, vector<16x32xf32> -> vector<16x32xf32>
    %63 = arith.addf %57, %62 : vector<16x32xf32>
    %64 = vector.shape_cast %63 : vector<16x32xf32> to vector<4x4x32xf32>
    %c0_75 = arith.constant 0 : index
    %c0_76 = arith.constant 0 : index
    %c0_77 = arith.constant 0 : index
    %65 = vector.load %arg3[%c0_75, %c0_76, %c0_77] : memref<1x1x32xf32, #tpu.memory_space<vmem>>, vector<1x1x32xf32>
    %66 = vector.broadcast %65 : vector<1x1x32xf32> to vector<4x4x32xf32>
    %67 = arith.addf %64, %66 : vector<4x4x32xf32>
    %cst_78 = arith.constant 0.000000e+00 : f32
    %68 = vector.broadcast %cst_78 : f32 to vector<4x4x32xf32>
    %69 = arith.maximumf %67, %68 : vector<4x4x32xf32>
    %70 = arith.truncf %69 : vector<4x4x32xf32> to vector<4x4x32xbf16>
    %c0_79 = arith.constant 0 : index
    %c0_80 = arith.constant 0 : index
    %c0_81 = arith.constant 0 : index
    %c0_82 = arith.constant 0 : index
    %71 = vector.load %arg4[%c0_79, %c0_80, %c0_81, %c0_82] : memref<1x4x4x32xbf16, #tpu.memory_space<vmem>>, vector<1x4x4x32xbf16>
    %72 = vector.shape_cast %71 : vector<1x4x4x32xbf16> to vector<4x4x32xbf16>
    %73 = vector.shape_cast %70 : vector<4x4x32xbf16> to vector<1x4x4x32xbf16>
    tpu.vector_store %arg4[%c0_79, %c0_80, %c0_81, %c0_82], %73 {strides = array<i32>} : memref<1x4x4x32xbf16, #tpu.memory_space<vmem>>, vector<1x4x4x32xbf16>,
    return
  }
  func.func @transform_0(%arg0: i32) -> (i32, i32, i32, i32) {
    %c0_i32 = arith.constant 0 : i32
    %c0_i32_0 = arith.constant 0 : i32
    %c0_i32_1 = arith.constant 0 : i32
    %c0_i32_2 = arith.constant 0 : i32
    return %arg0, %c0_i32, %c0_i32_0, %c0_i32_1 : i32, i32, i32, i32
  }
  func.func @transform_1(%arg0: i32) -> (i32, i32, i32) {
    %c0_i32 = arith.constant 0 : i32
    %c0_i32_0 = arith.constant 0 : i32
    %c0_i32_1 = arith.constant 0 : i32
    %c0_i32_2 = arith.constant 0 : i32
    return %c0_i32, %c0_i32_0, %c0_i32_1 : i32, i32, i32
  }
  func.func @transform_2(%arg0: i32) -> (i32, i32, i32) {
    %c0_i32 = arith.constant 0 : i32
    %c0_i32_0 = arith.constant 0 : i32
    %c0_i32_1 = arith.constant 0 : i32
    %c0_i32_2 = arith.constant 0 : i32
    return %c0_i32, %c0_i32_0, %c0_i32_1 : i32, i32, i32
  }
  func.func @transform_3(%arg0: i32) -> (i32, i32, i32, i32) {
    %c0_i32 = arith.constant 0 : i32
    %c0_i32_0 = arith.constant 0 : i32
    %c0_i32_1 = arith.constant 0 : i32
    %c0_i32_2 = arith.constant 0 : i32
    return %arg0, %c0_i32, %c0_i32_0, %c0_i32_1 : i32, i32, i32, i32
  }
}

</mosaic_0001>

<bundles_post_ra>
// kernel: tpu_custom_call.1
= control target key start
LH: loop header
LB: loop body
LE: loop exit
PB: predicated region body
PF: predicated region fallthrough
CT: control target
= control target key end

     0   :  { %8 = vsyncpa [#allocation4], 0  ;;  %s2827_s0 = inlined_call_operand.hbm [shape: bf16[2,4,4,32], index: 0, kind: input, shape index: {}]   ;;  %s2828_s1 = inlined_call_operand.hbm [shape: bf16[9,32,32], index: 1, kind: input, shape index: {}]   ;;  %s2829_s2 = inlined_call_operand.vmem [shape: f32[1,1,32], index: 2, kind: input, shape index: {}]   ;;  %s2830_s3 = inlined_call_operand.hbm [shape: bf16[2,4,4,32], index: 3, kind: output, shape index: {}]  }
   0x1   :  { %10 = vsyncpa [#allocation4 + $0x1], 0 }
   0x2   :  { %11 = vsyncpa [#allocation7], 0 }
   0x3   :  { %12 = vsyncpa [#allocation5], 0 }
   0x4   :  { %14 = vsyncpa [#allocation5 + $0x1], 0  ;;  %s2385_s12 = smov 0   ;;  %s2387_s13 = smov 0  }
   0x5   :  { %s2389_s14 = smov 0   ;;  %s2391_s15 = smov 0  }
   0x6 LB: > { %s2406_s16 = sadd.s32 4294967295, %s2350_s15   ;;  %s1898_s17 = sadd.s32 4294967294, %s2350_s15   ;;  %s2350_s15 = sphi %s2391_s15, %s2870_s15   ;;  %s2346_s14 = sphi %s2389_s14, %s2869_s14   ;;  %s2342_s13 = sphi %s2387_s13, %s2868_s13   ;;  %s2338_s12 = sphi %s2385_s12, %s2867_s12  }
   0x7   : > { %p40_p0 = scmp.ne.s32.totalorder %s2342_s13, %s2338_s12  ;;  %p2831_p1 = scmp.eq.s32.totalorder %s2406_s16, 0 }
   0x8   : > { %p112_p3 = scmp.eq.s32.totalorder %s1898_s17, 1  ;;  %p1899_p5 = scmp.ge.s32.totalorder %s2350_s15, 1 }
   0x9   : > { %p2415_p4 = por %p2831_p1, %p40_p0  ;;  %p119_p7 = scmp.lt.s32.totalorder %s2350_s15, 3 }
   0xa   : > { %p2420_p6 = por %p112_p3, %p40_p0  ;;  %s2352_s21 = smov [#allocation6]  }
   0xb   : > { %s2834_s18 = scalar_select %p2415_p4, 1, 0 }
   0xc   : > { %s2835_s19 = scalar_select %p2420_p6, 1, 0 }
   0xd   : > { %p2425_p8 = pnand %p1899_p5, %p119_p7  ;;  %s131_s22 = sshll.u32 %s2352_s21, 4  ;;  %s2429_s22 = int_to_ptr.vmem [resolvable:$true] %s131_s22 }
   0xe   : > { %s2441_s24 = sadd.s32 1, %s2350_s15   ;;  %s27_s25 = sadd.s32 1, %s2346_s14 }
   0xf   : > { %s2836_s20 = scalar_select %p2425_p8, 1, 0 }
  0x10   : > { %p2145_p9 = pneg %p2425_p8  ;;  %s24_s26 = ssub.s32 %s2350_s15, %s2441_s24 }
  0x11   : > { %s2222_s29 = scalar_lea.hbm %s2828_s1, 2304 }
  0x12   : > { %p2436_p11 = pnand %p2145_p9, %p2831_p1  ;;  %p2223_p12 = scmp.ne.s32.totalorder %s2828_s1, %s2222_s29 }
  0x13   : > { %p2229_p5 = scmp.lt.u32.totalorder %s2222_s29, %s2828_s1 }
  0x14   : > { %p2224_p13 = pneg %p2436_p11 }
  0x16   : > { %p2225_p0 = pnand %p2224_p13, %p2223_p12 }
  0x18   : > { %p2226_p3 = pneg %p2225_p0 }
  0x1a   : > { %p2231_p7 = pnand %p2229_p5, %p2226_p3 }
  0x1c   : > { %2234 = shalt.err (!%p2231_p7)
}
  0x1d   : > { %s2235_s7 = scalar_lea.vmem %s2429_s22, 2304  ;;  %p2243_p2 = scmp.lt.s32.totalorder %s2429_s22, %s2429_s22 }
  0x1e   : > { %p2236_p9 = scmp.ne.s32.totalorder %s2429_s22, %s2235_s7  ;;  %p2244_p6 = scmp.lt.s32.totalorder %s2235_s7, %s2235_s7 }
  0x20   : > { %p2238_p10 = pnand %p2236_p9, %p2224_p13  ;;  %p2245_p4 = por %p2244_p6, %p2243_p2 }
  0x22   : > { %p2239_p1 = pneg %p2238_p10 }
  0x24   : > { %p2246_p8 = pnand %p2245_p4, %p2239_p1 }
  0x26   : > { %2249 = shalt.err (!%p2246_p8)
}
  0x27   : > { %s2353_s8 = smov 64   ;;  %s2354_s9 = smov 4  }
  0x28   : > { %2148 = dma.hbm_to_vmem [thread:$0]  (!%p2436_p11), %s2828_s1, 2304, %s2429_s22, [#allocation7], %s2353_s8, %s2353_s8, %s2354_s9  }
  0x29   : > { %p25_p2 = scmp.eq.s32.totalorder %s24_s26, 0  ;;  %p34_p1 = scmp.ne.s32.totalorder %s2346_s14, %s2342_s13 }
  0x2a   : > { %p35_p4 = scmp.eq.s32.totalorder %s2350_s15, 0  ;;  %p2158_p6 = scmp.lt.s32.totalorder %s2350_s15, 2 }
  0x2b   : > { %s2472_s17 = scalar_select %p25_p2, %s2346_s14, %s27_s25  }
  0x2c   : > { %p36_p8 = por %p35_p4, %p34_p1  ;;  %p2838_p10 = scmp.eq.s32.totalorder %s2406_s16, 1 }
  0x2d   : > { %s148_s27 = sand.u32 1, %s2346_s14   ;;  %s2006_s28 = sshll.u32 %s2350_s15, 7 }
  0x2e   : > { %p2476_p12 = por %p2838_p10, %p34_p1  ;;  %s1902_s29 = sshll.u32 %s148_s27, 3 }
  0x2f   : > { %s2485_s4 = scalar_lea.hbm %s2827_s0, %s2006_s28  ;;  %s152_s22 = scalar_lea.vmem [#allocation3], %s1902_s29 }
  0x30   : > { %s159_s25 = sshll.u32 %s152_s22, 4  ;;  %p2487_p11 = pnand %p2158_p6, %p36_p8  ;;  %s2491_s25 = int_to_ptr.vmem [resolvable:$true] %s159_s25 }
  0x31   : > { %s2493_s5 = scalar_lea.sflag [#allocation4], %s148_s27  ;;  %s2250_s6 = scalar_lea.hbm %s2485_s4, 128 }
  0x32   : > { %p2251_p13 = scmp.ne.s32.totalorder %s2485_s4, %s2250_s6  ;;  %p2252_p0 = pneg %p2487_p11 }
  0x33   : > { %s2255_s9 = scalar_lea.hbm %s2827_s0, 256  ;;  %p2256_p7 = scmp.lt.u32.totalorder %s2485_s4, %s2827_s0 }
  0x34   : > { %p2253_p3 = pnand %p2252_p0, %p2251_p13  ;;  %p2257_p9 = scmp.lt.u32.totalorder %s2255_s9, %s2250_s6 }
  0x35   : > { %p2259_p1 = scmp.lt.u32.totalorder %s2250_s6, %s2485_s4 }
  0x36   : > { %p2254_p5 = pneg %p2253_p3  ;;  %p2258_p2 = por %p2257_p9, %p2256_p7 }
  0x38   : > { %p2260_p4 = por %p2259_p1, %p2258_p2 }
  0x3a   : > { %p2261_p6 = pnand %p2260_p4, %p2254_p5 }
  0x3c   : > { %2264 = shalt.err (!%p2261_p6)
}
  0x3d   : > { %s2265_s27 = scalar_lea.vmem %s2491_s25, 128  ;;  %s2355_s28 = smov [#allocation3]  }
  0x3e   : > { %p2266_p8 = scmp.ne.s32.totalorder %s2491_s25, %s2265_s27  ;;  %s2270_s29 = sshll.u32 %s2355_s28, 4  ;;  %s2271_s29 = int_to_ptr.vmem [resolvable:$false] %s2270_s29 }
  0x3f   : > { %s2272_s23 = scalar_lea.vmem %s2271_s29, 256  ;;  %p2273_p3 = scmp.lt.s32.totalorder %s2491_s25, %s2271_s29 }
  0x40   : > { %p2268_p10 = pnand %p2266_p8, %p2252_p0  ;;  %p2274_p7 = scmp.lt.s32.totalorder %s2272_s23, %s2265_s27 }
  0x42   : > { %p2269_p13 = pneg %p2268_p10  ;;  %p2275_p9 = por %p2274_p7, %p2273_p3 }
  0x44   : > { %p2276_p2 = pnand %p2275_p9, %p2269_p13 }
  0x46   : > { %2279 = shalt.err (!%p2276_p2)
}
  0x47   : > { %s2356_s30 = smov 32   ;;  %s2357_s22 = smov 2  }
  0x48   : > { %2152 = dma.hbm_to_vmem [thread:$0]  (!%p2487_p11), %s2485_s4, 128, %s2491_s25, %s2493_s5, %s2356_s30, %s2356_s30, %s2357_s22  }
  0x49   : > { %p2841_p0 = scmp.ne.s32.totalorder %s2836_s20, 0 }
  0x4a   : > { %s2524_s6 = sand.u32 (!%p2841_p0), 1, %s2342_s13   ;;  %p2842_p5 = scmp.ne.s32.totalorder (!%p2841_p0), %s2834_s18, 0 }
  0x4b   : > { %171 = sbr.rel (%p2841_p0) target bundleno = 421 (0x1a5), region = 32  ;;  %s1906_s7 = sshll.u32 (!%p2841_p0), %s2524_s6, 3 }
  0x4c   : > { %s174_s8 = scalar_lea.sflag (!%p2841_p0), [#allocation4], %s2524_s6  ;;  %s2530_s9 = scalar_lea.vmem (!%p2841_p0), [#allocation3], %s1906_s7 }
  0x52   : > { %2325 = dma.done.wait (%p2842_p5), %s174_s8, 128  }
  0x53   : > { %2327 = vsyncadd (%p2842_p5), %s174_s8, 4294967168  ;;  %p2843_p11 = scmp.eq.s32.totalorder %s2406_s16, 0 }
  0x55   : > { %2329 = dma.done.wait (%p2843_p11), [#allocation7], 2304   ;;  %p2844_p1 = pmov %p2843_p11 }
  0x56   : > { %vm205_vm0 = vcmask 257024   ;;  %v2358_v0 = vmov 0.0   ;;  %v2359_v1 = vmov 0   ;;  %vm2360_vm1 = vmmov 0   ;;  %v2204_v2 = vld [vmem:[#allocation6 + $0x40] sm:$0xff]   ;;  %v2205_v3 = vld [vmem:[#allocation6 + $0x10] sm:$0xff]  }
  0x57   : > { %2331 = vsyncadd (%p2844_p1), [#allocation7], 4294964992  ;;  %2067 = vmatprep.subr.bf16.mxu0 %v2358_v0  ;;  %2035 = vmatprep.subr.bf16.mxu1 %v2358_v0  ;;  %206 = vst.msk [vmem:[#allocation2] sm:$0xf] %vm205_vm0, %v2359_v1  ;;  %vm210_vm2 = vsmask.f32 7938  ;;  %v481_v20 = vlaneseq }
  0x58   : > { %208 = vst.msk [vmem:[#allocation2 + $0x14] sm:$0xf] %vm205_vm0, %v2359_v1  ;;  %2039 = vmatprep.mubr.msk.bf16.mxu1 %vm2360_vm1, %v2358_v0  ;;  %2071 = vmatprep.mubr.msk.bf16.mxu0 %vm2360_vm1, %v2358_v0  ;;  %vm296_vm3 = vcmask 256001   ;;  %v2206_v4 = vld [vmem:[#allocation6 + $0x48] sm:$0xff]   ;;  %vm448_vm4 = vcmask 1040384   ;;  %v2207_v5 = vld [vmem:[#allocation6 + $0x18] sm:$0xff]  }
  0x59   : > { %2068 = vmatpush3.bf16.msra.mxu0 %v2204_v2  ;;  %2036 = vmatpush3.bf16.msra.mxu1 %v2205_v3  ;;  %vm449_vm5 = vcmask 1042434   ;;  %v1909_v6 = vld.sshfl [vmem:[%s2530_s9] sm:$0x3 pattern:$0x76325410]  ;;  %vm451_vm7 = vcmask 1044484  }
  0x5a   : > { %2069 = vmatprep.subr.bf16.mxu0 %v2358_v0  ;;  %2037 = vmatprep.subr.bf16.mxu1 %v2358_v0  ;;  %v1910_v7 = vld.sshfl [vmem:[%s2530_s9 + $0x2] sm:$0x3 pattern:$0x76325410]  ;;  %v287_v8 = vrot.slane %v1909_v6, 7  ;;  %vm450_vm6 = vmor %vm448_vm4, %vm449_vm5  ;;  %vm209_vm8 = vcmask 253952  }
  0x5b   : > { %v1911_v9 = vld.sshfl [vmem:[%s2530_s9 + $0x4] sm:$0x3 pattern:$0x76325410]  ;;  %v288_v10 = vrot.slane %v1910_v7, 7  ;;  %vm2557_vm10 = vmor %vm450_vm6, %vm451_vm7  ;;  %vm453_vm11 = vcmask 1046534  }
  0x5c   : > { %v289_v11 = vrot.slane %v1911_v9, 7  ;;  %297 = vst.msk [vmem:[#allocation2 + $0x4] sm:$0x6] %vm296_vm3, %v287_v8  ;;  %vm231_vm9 = vsmask.f32 3328  ;;  %vm2562_vm12 = vmand %vm209_vm8, %vm210_vm2  ;;  %vm230_vm13 = vcmask 257027  }
  0x5d   : > { %2070 = vmatpush3.bf16.msra.mxu0 %v2206_v4  ;;  %2038 = vmatpush3.bf16.msra.mxu1 %v2207_v5  ;;  %298 = vst.msk [vmem:[#allocation2 + $0x8] sm:$0x6] %vm296_vm3, %v288_v10  ;;  %v1912_v13 = vld.sshfl [vmem:[%s2530_s9 + $0x6] sm:$0x3 pattern:$0x76325410]  ;;  %vm2576_vm0 = vmor %vm2557_vm10, %vm453_vm11 }
  0x5e   : > { %2075 = vmatprep.subr.bf16.mxu0 %v2358_v0  ;;  %v1917_v12 = vld.sshfl [vmem:[#allocation2] sm:$0x12 pattern:$0x76325410]  ;;  %2043 = vmatprep.subr.bf16.mxu1 %v2358_v0  ;;  %299 = vst.msk [vmem:[#allocation2 + $0xc] sm:$0x6] %vm296_vm3, %v289_v11 }
  0x5f   : > { %v423_v14 = vcombine.high %v1917_v12, %v1917_v12  ;;  %v290_v16 = vrot.slane %v1912_v13, 7  ;;  %v1921_v17 = vrot.slane %v1917_v12, 9  ;;  %v2361_v18 = vmov 1983009808   ;;  %v212_v22 = vld [vmem:[#allocation2] sm:$0x1] }
  0x60   : > { %v479_v19 = vunpack.c.l.s4 %v2361_v18  ;;  %vm341_vm14 = vsmask.f32 1280  ;;  %vm342_vm15 = vsmask.f32 3336  ;;  %v215_v23 = vld [vmem:[#allocation2 + $0x4] sm:$0x1] }
  0x61   : > { %300 = vst.msk [vmem:[#allocation2 + $0x10] sm:$0x6] %vm296_vm3, %v290_v16  ;;  %v218_v24 = vld [vmem:[#allocation2 + $0x8] sm:$0x1]  ;;  %v457_v25 = vrot.slane %v423_v14, 7  ;;  %v213_v26 = vsel %vm2562_vm12, 0, %v212_v22  ;;  %vm2584_vm3 = vmand %vm230_vm13, %vm231_vm9 }
  0x62   : > { %v216_v27 = vsel %vm2562_vm12, 0, %v215_v23  ;;  %v219_v28 = vsel %vm2562_vm12, 0, %v218_v24  ;;  %v221_v29 = vld [vmem:[#allocation2 + $0xc] sm:$0x1]  ;;  %v480_v32 = vunpack.c.0.s8 %v479_v19  ;;  %v482_v33 = vshrl.u32 %v481_v20, 7  ;;  %vm2609_vm8 = vmor %vm341_vm14, %vm342_vm15  ;;  %s203_s4 = scalar_lea.vmem [#allocation8], %s1906_s7 }
  0x63   : > { %v1918_v30 = vld.sshfl [vmem:[#allocation2 + $0x4] sm:$0x12 pattern:$0x76325410]  ;;  %214 = vst [vmem:[#allocation2] sm:$0x1] %v213_v26  ;;  %v458_v43 = vsel %vm2576_vm0, %v1921_v17, %v457_v25 }
  0x64   : > { %217 = vst [vmem:[#allocation2 + $0x4] sm:$0x1] %v216_v27  ;;  %220 = vst [vmem:[#allocation2 + $0x8] sm:$0x1] %v219_v28  ;;  %v222_v34 = vsel %vm2562_vm12, 0, %v221_v29  ;;  %v431_v36 = vcombine.high %v1918_v30, %v1918_v30  ;;  %v1922_v37 = vrot.slane %v1918_v30, 9  ;;  %v2590_v49 = vsub.s32 %v480_v32, %v482_v33 }
  0x65   : > { %vm344_vm2 = vsmask.f32 5392  ;;  %v1919_v35 = vld.sshfl [vmem:[#allocation2 + $0x8] sm:$0x12 pattern:$0x76325410] }
  0x66   : > { %223 = vst [vmem:[#allocation2 + $0xc] sm:$0x1] %v222_v34  ;;  %v1920_v39 = vld.sshfl [vmem:[#allocation2 + $0xc] sm:$0x12 pattern:$0x76325410]  ;;  %v439_v40 = vcombine.high %v1919_v35, %v1919_v35  ;;  %vm2625_vm10 = vmor %vm2609_vm8, %vm344_vm2 }
  0x67   : > { %v1923_v41 = vrot.slane %v1919_v35, 9  ;;  %v447_v42 = vcombine.high %v1920_v39, %v1920_v39  ;;  %v461_v44 = vrot.slane %v431_v36, 7  ;;  %v1924_v45 = vrot.slane %v1920_v39, 9  ;;  %v236_v46 = vld [vmem:[#allocation2 + $0x4] sm:$0x8]  ;;  %v2209_v20 = vld [vmem:[#allocation6] sm:$0xff]  }
  0x68   : > { %vm505_vm4 = vcmask 261120   ;;  %vm346_vm5 = vsmask.f32 7448  ;;  %v239_v47 = vld [vmem:[#allocation2 + $0x8] sm:$0x8]  ;;  %v465_v48 = vrot.slane %v439_v40, 7 }
  0x69   : > { %v1952_v50 = vld.sshfl [vmem:[#allocation2 + $0x10] sm:$0x12 pattern:$0x76325410]  ;;  %v237_v51 = vsel %vm2584_vm3, 0, %v236_v46  ;;  %v462_v52 = vsel %vm2576_vm0, %v1922_v37, %v461_v44  ;;  %v469_v53 = vrot.slane %v447_v42, 7  ;;  %vm2635_vm13 = vmor %vm2625_vm10, %vm346_vm5 }
  0x6a   : > { %v1017_v54 = vcombine.high %v1952_v50, %v1952_v50  ;;  %v1956_v55 = vrot.slane %v1952_v50, 9  ;;  %238 = vst [vmem:[#allocation2 + $0x4] sm:$0x8] %v237_v51  ;;  %v242_v56 = vld [vmem:[#allocation2 + $0xc] sm:$0x8]  ;;  %v466_v58 = vsel %vm2576_vm0, %v1923_v41, %v465_v48  ;;  %v476_v59 = vcombine.low %v458_v43, %v462_v52  ;;  %v2208_v33 = vld [vmem:[#allocation6 + $0x50] sm:$0xff]  }
  0x6b   : > { %v245_v57 = vld [vmem:[#allocation2 + $0x10] sm:$0x8]  ;;  %v240_v60 = vsel %vm2584_vm3, 0, %v239_v47  ;;  %v243_v61 = vsel %vm2584_vm3, 0, %v242_v56  ;;  %vm663_vm6 = vsmask.f32 256  ;;  %v470_v62 = vsel %vm2576_vm0, %v1924_v45, %v469_v53 }
  0x6c   : > { %vm664_vm7 = vsmask.f32 2312  ;;  %v1032_v63 = vrot.slane %v1017_v54, 7  ;;  %v1039_v1 = vcombine.low %v462_v52, %v466_v58  ;;  %241 = vst [vmem:[#allocation2 + $0x8] sm:$0x8] %v240_v60  ;;  %v246_v3 = vsel %vm2584_vm3, 0, %v245_v57 }
  0x6d   : > { %v1913_v2 = vld.sshfl [vmem:[#allocation2] sm:$0x13 pattern:$0x76325410]  ;;  %244 = vst [vmem:[#allocation2 + $0xc] sm:$0x8] %v243_v61  ;;  %v477_v4 = vcombine.low %v466_v58, %v470_v62  ;;  %v484_v5 = vrot.slane %v476_v59, %v2590_v49  ;;  %vm2649_vm14 = vmor %vm663_vm6, %vm664_vm7 }
  0x6e   : > { %v1914_v6 = vld.sshfl [vmem:[#allocation2 + $0x4] sm:$0x13 pattern:$0x76325410]  ;;  %v316_v7 = vcombine.high %v1913_v2, %v1913_v2  ;;  %v349_v9 = vshrl.u32 %v1913_v2, 16  ;;  %v2615_v10 = vsel %vm2576_vm0, %v1956_v55, %v1032_v63  ;;  %v1047_v11 = vrot.slane %v1039_v1, %v2590_v49  ;;  %v2211_v40 = vld [vmem:[#allocation6 + $0x8] sm:$0xff]  }
  0x6f   : > { %247 = vst [vmem:[#allocation2 + $0x10] sm:$0x8] %v246_v3  ;;  %v1915_v12 = vld.sshfl [vmem:[#allocation2 + $0x8] sm:$0x13 pattern:$0x76325410]  ;;  %v324_v13 = vcombine.high %v1914_v6, %v1914_v6  ;;  %v2619_v15 = vrot.slane %v477_v4, %v2590_v49  ;;  %v1040_v16 = vcombine.low %v470_v62, %v2615_v10 }
  0x70   : > { %v352_v14 = vshll.u32 %v1913_v2, 16  ;;  %vm666_vm9 = vsmask.f32 4368  ;;  %v332_v18 = vcombine.high %v1915_v12, %v1915_v12  ;;  %v351_v19 = vrot.slane %v349_v9, 6  ;;  %v2210_v50 = vld [vmem:[#allocation6 + $0x58] sm:$0xff]   ;;  %s1815_s25 = sshll.u32 %s203_s4, 4  ;;  %s2775_s25 = int_to_ptr.vmem [resolvable:$true] %s1815_s25 }
  0x71   : > { %v1916_v17 = vld.sshfl [vmem:[#allocation2 + $0xc] sm:$0x13 pattern:$0x76325410]  ;;  %v358_v25 = vshll.u32 %v316_v7, 16  ;;  %v363_v26 = vshrl.u32 %v1914_v6, 16  ;;  %v492_v27 = vcombine.low %v484_v5, %v2619_v15  ;;  %v1054_v28 = vrot.slane %v1040_v16, %v2590_v49  ;;  %vm2661_vm15 = vmor %vm2649_vm14, %vm666_vm9 }
  0x72   : > { %v340_v22 = vcombine.high %v1916_v17, %v1916_v17  ;;  %v354_v24 = vrot.slane %v352_v14, 7  ;;  %v366_v29 = vshll.u32 %v1914_v6, 16  ;;  %v372_v30 = vshll.u32 %v324_v13, 16  ;;  %v233_v23 = vld [vmem:[#allocation2] sm:$0x8]  ;;  %s2007_s26 = sshll.u32 %s2406_s16, 7 }
  0x73   : > { %vm668_vm11 = vsmask.f32 6424  ;;  %v1960_v32 = vld.sshfl [vmem:[#allocation2 + $0x4] sm:$0x32 pattern:$0x76325410]  ;;  %2040 = vmatmul.mubr.msk.bf16.vlgmr.msra.gmra.mrb[0].mxu1 %vm505_vm4, %v492_v27  ;;  %v1055_v39 = vcombine.low %v1047_v11, %v1054_v28  ;;  %s2780_s11 = scalar_lea.hbm %s2830_s3, %s2007_s26 }
  0x74   : > { %v355_v34 = vor.u32 %v354_v24, %v351_v19  ;;  %v360_v35 = vrot.slane %v358_v25, 7  ;;  %v365_v36 = vrot.slane %v363_v26, 6  ;;  %v377_v37 = vshrl.u32 %v1915_v12, 16  ;;  %2044 = vmatpush3.bf16.msra.mxu1 %v2209_v20  ;;  %2047 = vmatprep.mubr.msk.bf16.mxu1 %vm2360_vm1, %v2358_v0  ;;  %vm2676_vm2 = vmor %vm2661_vm15, %vm668_vm11  ;;  %s1802_s16 = scalar_lea.sflag [#allocation5], %s2524_s6  ;;  %s2280_s27 = scalar_lea.vmem %s2775_s25, 128 }
  0x75   : > { %v368_v42 = vrot.slane %v366_v29, 7  ;;  %v374_v43 = vrot.slane %v372_v30, 7  ;;  %v380_v44 = vshll.u32 %v1915_v12, 16  ;;  %v386_v47 = vshll.u32 %v332_v18, 16  ;;  %2072 = vmatmul.mubr.msk.bf16.vlgmr.msra.gmra.mrb[0].mxu0 %vm505_vm4, %v1055_v39  ;;  %2045 = vmatprep.subr.bf16.mxu1 %v2358_v0  ;;  %v224_v29 = vld [vmem:[#allocation2 + $0x10] sm:$0x1]  ;;  %p2281_p4 = scmp.ne.s32.totalorder %s2775_s25, %s2280_s27 }
  0x76   : > { %v356_v45 = vrot.slane %v355_v34, 2  ;;  %v379_v46 = vrot.slane %v377_v37, 6  ;;  %v391_v48 = vshrl.u32 %v1916_v17, 16  ;;  %v394_v53 = vshll.u32 %v1916_v17, 16  ;;  %2076 = vmatpush3.bf16.msra.mxu0 %v2208_v33  ;;  %2079 = vmatprep.mubr.msk.bf16.mxu0 %vm2360_vm1, %v2358_v0  ;;  %s2362_s28 = smov [#allocation8]  }
  0x77   : > { %v369_v51 = vor.u32 %v368_v42, %v365_v36  ;;  %v382_v52 = vrot.slane %v380_v44, 7  ;;  %v400_v54 = vshll.u32 %v340_v22, 16  ;;  %v388_v56 = vrot.slane %v386_v47, 7  ;;  %2077 = vmatprep.subr.bf16.mxu0 %v2358_v0  ;;  %p2282_p6 = pnand %p2281_p4, %p2476_p12  ;;  %s2284_s29 = sshll.u32 %s2362_s28, 4  ;;  %s2285_s29 = int_to_ptr.vmem [resolvable:$false] %s2284_s29 }
  0x78   : > { %v361_v55 = vsel %vm2635_vm13, %v356_v45, %v360_v35  ;;  %v393_v57 = vrot.slane %v391_v48, 6  ;;  %v1961_v59 = vld.sshfl [vmem:[#allocation2 + $0x8] sm:$0x32 pattern:$0x76325410]  ;;  %v1129_v60 = vcombine.high %v1960_v32, %v1960_v32  ;;  %v396_v63 = vrot.slane %v394_v53, 7  ;;  %2046 = vmatpush3.bf16.msra.mxu1 %v2211_v40  ;;  %p2287_p10 = scmp.lt.s32.totalorder %s2775_s25, %s2285_s29 }
  0x79   : > { %v370_v61 = vrot.slane %v369_v51, 2  ;;  %v383_v62 = vor.u32 %v382_v52, %v379_v46  ;;  %v402_v1 = vrot.slane %v400_v54, 7  ;;  %v1962_v2 = vld.sshfl [vmem:[#allocation2 + $0xc] sm:$0x32 pattern:$0x76325410]  ;;  %v1137_v3 = vcombine.high %v1961_v59, %v1961_v59  ;;  %2051 = vmatprep.subr.bf16.mxu1 %v2358_v0  ;;  %p2283_p8 = pneg %p2282_p6 }
  0x7a   : > { %v1155_v4 = vshrl.u32 %v1960_v32, 16  ;;  %v1160_v5 = vshrl.u32 %v1129_v60, 16  ;;  %v397_v8 = vor.u32 %v396_v63, %v393_v57  ;;  %v1963_v11 = vld.sshfl [vmem:[#allocation2 + $0x10] sm:$0x32 pattern:$0x76325410]  ;;  %v1145_v12 = vcombine.high %v1962_v2, %v1962_v2  ;;  %2078 = vmatpush3.bf16.msra.mxu0 %v2210_v50 }
  0x7b   : > { %v2656_v6 = vsel %vm2635_vm13, %v370_v61, %v374_v43  ;;  %v384_v7 = vrot.slane %v383_v62, 2  ;;  %v1153_v14 = vcombine.high %v1963_v11, %v1963_v11  ;;  %2083 = vmatprep.subr.bf16.mxu0 %v2358_v0  ;;  %v1163_v20 = vshll.u32 %v1129_v60, 16  ;;  %v227_v35 = vld [vmem:[#allocation2 + $0x14] sm:$0x1]  ;;  %v2213_v54 = vld [vmem:[#allocation6 + $0x20] sm:$0xff]   ;;  %s2286_s23 = scalar_lea.vmem %s2285_s29, 256 }
  0x7c   : > { %v550_v13 = vcombine.low %v361_v55, %v2656_v6  ;;  %v1964_v16 = vrot.slane %v1155_v4, 9  ;;  %v1162_v17 = vrot.slane %v1160_v5, 7  ;;  %v398_v19 = vrot.slane %v397_v8, 2  ;;  %v248_v62 = vld [vmem:[#allocation2 + $0x14] sm:$0x8]  ;;  %p2288_p13 = scmp.lt.s32.totalorder %s2286_s23, %s2280_s27 }
  0x7d   : > { %v2670_v18 = vsel %vm2635_vm13, %v384_v7, %v388_v56  ;;  %v1168_v22 = vshrl.u32 %v1961_v59, 16  ;;  %v1173_v26 = vshrl.u32 %v1137_v3, 16  ;;  %v1176_v27 = vshll.u32 %v1137_v3, 16  ;;  %v2212_v7 = vld [vmem:[#allocation6 + $0x60] sm:$0xff]  }
  0x7e   : > { %v558_v24 = vrot.slane %v550_v13, %v2590_v49  ;;  %v1181_v28 = vshrl.u32 %v1962_v2, 16  ;;  %v2682_v30 = vsel %vm2635_vm13, %v398_v19, %v402_v1  ;;  %v1165_v32 = vor.u32 %v1163_v20, %v1162_v17  ;;  %v2215_v1 = vld [vmem:[#allocation6 + $0x28] sm:$0xff]   ;;  %p2289_p3 = por %p2288_p13, %p2287_p10 }
  0x7f   : > { %v1965_v33 = vrot.slane %v1168_v22, 9  ;;  %v1186_v34 = vshrl.u32 %v1145_v12, 16  ;;  %v551_v36 = vcombine.low %v2670_v18, %v2682_v30  ;;  %v1175_v37 = vrot.slane %v1173_v26, 7 }
  0x80   : > { %v1966_v39 = vrot.slane %v1181_v28, 9  ;;  %v1189_v40 = vshll.u32 %v1145_v12, 16  ;;  %v2688_v42 = vsel %vm2676_vm2, %v1964_v16, %v1165_v32  ;;  %v1194_v44 = vshrl.u32 %v1963_v11, 16  ;;  %p2290_p7 = pnand %p2289_p3, %p2283_p8 }
  0x81   : > { %v1188_v43 = vrot.slane %v1186_v34, 7  ;;  %v1199_v45 = vshrl.u32 %v1153_v14, 16  ;;  %v2691_v46 = vrot.slane %v551_v36, %v2590_v49  ;;  %v1178_v47 = vor.u32 %v1176_v27, %v1175_v37  ;;  %v2214_v27 = vld [vmem:[#allocation6 + $0x68] sm:$0xff]  }
  0x82   : > { %v1202_v48 = vshll.u32 %v1153_v14, 16  ;;  %v234_v50 = vsel %vm2584_vm3, 0, %v233_v23  ;;  %v1967_v52 = vrot.slane %v1194_v44, 9  ;;  %v225_v55 = vsel %vm2562_vm12, 0, %v224_v29 }
  0x83   : > { %v1191_v51 = vor.u32 %v1189_v40, %v1188_v43  ;;  %v1201_v53 = vrot.slane %v1199_v45, 7  ;;  %235 = vst [vmem:[#allocation2] sm:$0x8] %v234_v50  ;;  %v566_v56 = vcombine.low %v558_v24, %v2691_v46  ;;  %v2700_v57 = vsel %vm2676_vm2, %v1965_v33, %v1178_v47  ;;  %226 = vst [vmem:[#allocation2 + $0x10] sm:$0x1] %v225_v55 }
  0x84   : > { %v228_v58 = vsel %vm2562_vm12, 0, %v227_v35  ;;  %v1211_v61 = vcombine.low %v2688_v42, %v2700_v57  ;;  %v249_v21 = vsel %vm2584_vm3, 0, %v248_v62  ;;  %v1981_v37 = vld.sshfl [vmem:[#allocation2 + $0x14] sm:$0x12 pattern:$0x76325410] }
  0x85   : > { %v1192_v59 = vsel %vm2676_vm2, %v1966_v39, %v1191_v51  ;;  %v1204_v60 = vor.u32 %v1202_v48, %v1201_v53  ;;  %229 = vst [vmem:[#allocation2 + $0x14] sm:$0x1] %v228_v58  ;;  %2048 = vmatmul.mubr.msk.bf16.vlgmr.msra.gmra.mrb[0].mxu1 %vm505_vm4, %v566_v56  ;;  %250 = vst [vmem:[#allocation2 + $0x14] sm:$0x8] %v249_v21  ;;  %v1502_v50 = vcombine.high %v1981_v37, %v1981_v37  ;;  %v2217_v58 = vld [vmem:[#allocation6 + $0x30] sm:$0xff]  }
  0x86   : > { %2052 = vmatpush3.bf16.msra.mxu1 %v2213_v54  ;;  %2055 = vmatprep.mubr.msk.bf16.mxu1 %vm2360_vm1, %v2358_v0  ;;  %v1219_v3 = vrot.slane %v1211_v61, %v2590_v49  ;;  %v728_v34 = vcombine.low %v2700_v57, %v1192_v59  ;;  %v903_v21 = vcombine.low %v2656_v6, %v2670_v18 }
  0x87   : > { %v2711_v63 = vsel %vm2676_vm2, %v1967_v52, %v1204_v60  ;;  %2053 = vmatprep.subr.bf16.mxu1 %v2358_v0  ;;  %v1517_v60 = vrot.slane %v1502_v50, 7 }
  0x88   : > { %v1212_v2 = vcombine.low %v1192_v59, %v2711_v63  ;;  %v742_v52 = vrot.slane %v728_v34, %v2590_v49  ;;  %v1985_v59 = vrot.slane %v1981_v37, 9  ;;  %v911_v6 = vrot.slane %v903_v21, %v2590_v49 }
  0x8a   : > { %v1226_v4 = vrot.slane %v1212_v2, %v2590_v49  ;;  %v1931_v5 = vld.sshfl [vmem:[#allocation2] sm:$0x32 pattern:$0x76325410]  ;;  %2054 = vmatpush3.bf16.msra.mxu1 %v2215_v1  ;;  %v1518_v41 = vsel %vm2576_vm0, %v1985_v59, %v1517_v60 }
  0x8b   : > { %v638_v8 = vcombine.high %v1931_v5, %v1931_v5  ;;  %v671_v9 = vshrl.u32 %v1931_v5, 16  ;;  %v1973_v11 = vld.sshfl [vmem:[#allocation2 + $0x10] sm:$0x13 pattern:$0x76325410]  ;;  %2059 = vmatprep.subr.bf16.mxu1 %v2358_v0 }
  0x8c   : > { %v1227_v12 = vcombine.low %v1219_v3, %v1226_v4  ;;  %v1974_v13 = vld.sshfl [vmem:[#allocation2 + $0x14] sm:$0x13 pattern:$0x76325410]  ;;  %v1318_v14 = vcombine.high %v1973_v11, %v1973_v11  ;;  %v1356_v38 = vshrl.u32 %v1973_v11, 16  ;;  %v1359_v16 = vshll.u32 %v1973_v11, 16 }
  0x8d   : > { %v676_v17 = vshrl.u32 %v638_v8, 16  ;;  %v679_v19 = vshll.u32 %v638_v8, 16  ;;  %v1326_v20 = vcombine.high %v1974_v13, %v1974_v13  ;;  %v1370_v26 = vshrl.u32 %v1974_v13, 16  ;;  %v2216_v3 = vld [vmem:[#allocation6 + $0x70] sm:$0xff]   ;;  %v2219_v4 = vld [vmem:[#allocation6 + $0x38] sm:$0xff]  }
  0x8e   : > { %2080 = vmatmul.mubr.msk.bf16.vlgmr.msra.gmra.mrb[0].mxu0 %vm505_vm4, %v1227_v12  ;;  %v1358_v22 = vrot.slane %v1356_v38, 6  ;;  %v1361_v23 = vrot.slane %v1359_v16, 7  ;;  %v1365_v24 = vshll.u32 %v1318_v14, 16  ;;  %v1935_v28 = vrot.slane %v671_v9, 9  ;;  %v2218_v8 = vld [vmem:[#allocation6 + $0x78] sm:$0xff]   ;;  %v2220_v38 = vld [vmem:[#allocation6 + $0x80] sm:$0xff]  }
  0x8f   : > { %2084 = vmatpush3.bf16.msra.mxu0 %v2212_v7  ;;  %2087 = vmatprep.mubr.msk.bf16.mxu0 %vm2360_vm1, %v2358_v0  ;;  %v678_v29 = vrot.slane %v676_v17, 7  ;;  %v1373_v32 = vshll.u32 %v1974_v13, 16  ;;  %v1379_v33 = vshll.u32 %v1326_v20, 16  ;;  %v1372_v36 = vrot.slane %v1370_v26, 6 }
  0x90   : > { %2085 = vmatprep.subr.bf16.mxu0 %v2358_v0  ;;  %v1362_v35 = vor.u32 %v1361_v23, %v1358_v22  ;;  %v1367_v40 = vrot.slane %v1365_v24, 7  ;;  %v1992_v53 = vld.sshfl [vmem:[#allocation2 + $0x14] sm:$0x32 pattern:$0x76325410] }
  0x91   : > { %v681_v39 = vor.u32 %v679_v19, %v678_v29  ;;  %v1375_v43 = vrot.slane %v1373_v32, 7  ;;  %v1381_v48 = vrot.slane %v1379_v33, 7  ;;  %v1638_v61 = vcombine.high %v1992_v53, %v1992_v53  ;;  %v2221_v19 = vld [vmem:[#allocation6 + $0x88] sm:$0xff]  }
  0x92   : > { %v1363_v44 = vrot.slane %v1362_v35, 2  ;;  %v1679_v9 = vshrl.u32 %v1992_v53, 16 }
  0x93   : > { %2086 = vmatpush3.bf16.msra.mxu0 %v2214_v27  ;;  %v682_v45 = vsel %vm2676_vm2, %v1935_v28, %v681_v39  ;;  %v1376_v47 = vor.u32 %v1375_v43, %v1372_v36  ;;  %v1684_v5 = vshrl.u32 %v1638_v61, 16  ;;  %v1687_v31 = vshll.u32 %v1638_v61, 16 }
  0x94   : > { %2091 = vmatprep.subr.bf16.mxu0 %v2358_v0  ;;  %v727_v51 = vcombine.low %v682_v45, %v2688_v42  ;;  %v1368_v54 = vsel %vm2635_vm13, %v1363_v44, %v1367_v40  ;;  %v1996_v13 = vrot.slane %v1679_v9, 9 }
  0x95   : > { %v1377_v55 = vrot.slane %v1376_v47, 2  ;;  %v904_v2 = vcombine.low %v2682_v30, %v1368_v54  ;;  %v1525_v30 = vcombine.low %v2615_v10, %v1518_v41  ;;  %v1686_v11 = vrot.slane %v1684_v5, 7 }
  0x96   : > { %v735_v56 = vrot.slane %v727_v51, %v2590_v49 }
  0x97   : > { %v1382_v57 = vsel %vm2635_vm13, %v1377_v55, %v1381_v48  ;;  %v918_v18 = vrot.slane %v904_v2, %v2590_v49  ;;  %v1539_v12 = vrot.slane %v1525_v30, %v2590_v49  ;;  %v1689_v14 = vor.u32 %v1687_v31, %v1686_v11 }
  0x98   : > { %v743_v62 = vcombine.low %v735_v56, %v742_v52  ;;  %v1389_v1 = vcombine.low %v1368_v54, %v1382_v57 }
  0x99   : > { %v1540_v10 = vcombine.low %v2619_v15, %v1539_v12  ;;  %v1690_v16 = vsel %vm2676_vm2, %v1996_v13, %v1689_v14 }
  0x9a   : > { %2056 = vmatmul.mubr.msk.bf16.vlgmr.msra.gmra.mrb[0].mxu1 %vm505_vm4, %v743_v62  ;;  %v1403_v42 = vrot.slane %v1389_v1, %v2590_v49  ;;  %v1697_v17 = vcombine.low %v2711_v63, %v1690_v16  ;;  %v2000_v63 = vld [vmem:[%s2829_s2] ss:$0 sm:$0xff] }
  0x9b   : > { %2060 = vmatpush3.bf16.msra.mxu1 %v2217_v58  ;;  %2063 = vmatprep.mubr.msk.bf16.mxu1 %vm2360_vm1, %v2358_v0 }
  0x9c   : > { %v1404_v7 = vcombine.low %v2691_v46, %v1403_v42  ;;  %2061 = vmatprep.subr.bf16.mxu1 %v2358_v0  ;;  %v919_v46 = vcombine.low %v911_v6, %v918_v18  ;;  %v1711_v20 = vrot.slane %v1697_v17, %v2590_v49 }
  0x9e   : > { %2088 = vmatmul.mubr.msk.bf16.vlgmr.msra.gmra.mrb[0].mxu0 %vm505_vm4, %v1404_v7  ;;  %v1712_v22 = vcombine.low %v742_v52, %v1711_v20 }
  0x9f   : > { %2092 = vmatpush3.bf16.msra.mxu0 %v2216_v3  ;;  %2062 = vmatpush3.bf16.msra.mxu1 %v2219_v4 }
  0xa0   : > { %2093 = vmatprep.subr.bf16.mxu0 %v2358_v0  ;;  %2095 = vmatprep.mubr.msk.bf16.mxu0 %vm2360_vm1, %v2358_v0 }
  0xa3   : > { %2094 = vmatpush3.bf16.msra.mxu0 %v2218_v8 }
  0xa4   : > { %2099 = vmatprep.subr.bf16.mxu0 %v2358_v0 }
  0xa6   : > { %2064 = vmatmul.mubr.msk.bf16.vlgmr.msra.gmra.mrb[0].mxu1 %vm505_vm4, %v919_v46 }
  0xaa   : > { %2096 = vmatmul.mubr.msk.bf16.vlgmr.msra.gmra.mrb[0].mxu0 %vm505_vm4, %v1540_v10 }
  0xab   : > { %2100 = vmatpush3.bf16.msra.mxu0 %v2220_v38  ;;  %2103 = vmatprep.mubr.msk.bf16.mxu0 %vm2360_vm1, %v2358_v0  ;;  %vm1796_vm1 = vcmask 254976  }
  0xac   : > { %2101 = vmatprep.subr.bf16.mxu0 %v2358_v0 }
  0xaf   : > { %2102 = vmatpush3.bf16.msra.mxu0 %v2221_v19 }
  0xb6   : > { %2104 = vmatmul.mubr.msk.bf16.vlgmr.msra.gmra.mrb[0].mxu0 %vm505_vm4, %v1712_v22 }
 0x179   : > { %v969_v15 = vpop.f32.mrb[0].mxu1 }
 0x17a   : > { %v2065_v25 = vpop.f32.mrb[1].mxu1 }
 0x17b   : > { %v972_v23 = vpop.f32.mrb[2].mxu1 }
 0x17c   : > { %v2066_v24 = vpop.f32.mrb[3].mxu1 }
 0x189   : > { %v1762_v26 = vpop.f32.mrb[0].mxu0 }
 0x18a   : > { %v2107_v27 = vadd.f32 %v1762_v26, %v969_v15  ;;  %v2105_v28 = vpop.f32.mrb[1].mxu0 }
 0x18b   : > { %v1765_v29 = vpop.f32.mrb[2].mxu0 }
 0x18c   : > { %v1773_v0 = vcombine.high %v2107_v27, %v2107_v27  ;;  %v1784_v49 = vadd.f32 %v2107_v27, %v2000_v63  ;;  %v2108_v32 = vadd.f32 %v1765_v29, %v972_v23  ;;  %v2106_v33 = vpop.f32.mrb[3].mxu0 }
 0x18e   : > { %v1785_v34 = vadd.f32 %v2000_v63, %v1773_v0  ;;  %v1788_v35 = vmax.f32 %v1784_v49, 0.0  ;;  %v1774_v36 = vcombine.high %v2108_v32, %v2108_v32  ;;  %v1786_v37 = vadd.f32 %v2108_v32, %v2000_v63 }
 0x190   : > { %v1789_v39 = vmax.f32 %v1785_v34, 0.0  ;;  %v1792_v40 = vpack.c.bf16 %v1788_v35, %v1788_v35  ;;  %v1787_v43 = vadd.f32 %v2000_v63, %v1774_v36  ;;  %v1790_v44 = vmax.f32 %v1786_v37, 0.0 }
 0x192   : > { %v1793_v45 = vpack.c.bf16 %v1789_v39, %v1789_v39  ;;  %1797 = vst.msk [vmem:[%s203_s4] sm:$0x3] %vm1796_vm1, %v1792_v40  ;;  %v1791_v47 = vmax.f32 %v1787_v43, 0.0  ;;  %v1794_v48 = vpack.c.bf16 %v1790_v44, %v1790_v44 }
 0x194   : > { %1798 = vst.msk [vmem:[%s203_s4 + $0x2] sm:$0x3] %vm1796_vm1, %v1793_v45  ;;  %v1795_v50 = vpack.c.bf16 %v1791_v47, %v1791_v47  ;;  %1799 = vst.msk [vmem:[%s203_s4 + $0x4] sm:$0x3] %vm1796_vm1, %v1794_v48 }
 0x196   : > { %1800 = vst.msk [vmem:[%s203_s4 + $0x6] sm:$0x3] %vm1796_vm1, %v1795_v50 }
 0x197   : > { %2293 = shalt.err (!%p2290_p7)
}
 0x198   : > { %s2294_s30 = scalar_lea.hbm %s2780_s11, 128  ;;  %s2298_s8 = scalar_lea.hbm %s2830_s3, 256 }
 0x199   : > { %p2295_p9 = scmp.ne.s32.totalorder %s2780_s11, %s2294_s30  ;;  %p2299_p5 = scmp.lt.u32.totalorder %s2780_s11, %s2830_s3 }
 0x19a   : > { %p2300_p11 = scmp.lt.u32.totalorder %s2298_s8, %s2294_s30  ;;  %p2302_p4 = scmp.lt.u32.totalorder %s2294_s30, %s2780_s11 }
 0x19b   : > { %p2296_p2 = pnand %p2295_p9, %p2476_p12 }
 0x19c   : > { %p2301_p1 = por %p2300_p11, %p2299_p5 }
 0x19d   : > { %p2297_p0 = pneg %p2296_p2 }
 0x19e   : > { %p2303_p6 = por %p2302_p4, %p2301_p1 }
 0x1a0   : > { %p2304_p8 = pnand %p2303_p6, %p2297_p0 }
 0x1a2   : > { %2307 = shalt.err (!%p2304_p8)
}
 0x1a3   : > { %s2363_s20 = smov 32   ;;  %s2364_s4 = smov 2  }
 0x1a4   : > { %2143 = dma.vmem_to_hbm [thread:$0]  (%p2476_p12), %s2775_s25, 128, %s2780_s11, %s1802_s16, %s2363_s20, %s2363_s20, %s2364_s4  }
 0x1a5 PF: > { %s1830_s26 = sand.u32 1, %s2338_s12   ;;  %p2865_p10 = scmp.ne.s32.totalorder %s2835_s19, 0 }
 0x1a6   : > { %p2866_p13 = scmp.ge.s32.totalorder %s2350_s15, 2  ;;  %s1831_s5 = scalar_lea.sflag [#allocation5], %s1830_s26 }
 0x1a8   : > { %p2154_p3 = pnand %p2866_p13, %p2865_p10 }
 0x1aa   : > { %2333 = dma.done.wait (!%p2154_p3), %s1831_s5, 128  }
 0x1ab   : > { %2335 = vsyncadd (!%p2154_p3), %s1831_s5, 4294967168  ;;  %p17_p7 = scmp.ge.s32.totalorder %s2441_s24, 4   ;;  %s2867_s12 = smov %s2342_s13 }
 0x1ac   : > { %s2868_s13 = smov %s2346_s14  ;;  %s2869_s14 = smov %s2472_s17 }
 0x1ad   : > { %s2870_s15 = smov %s2441_s24  ;;  %19 = sbr.rel (!%p17_p7) target bundleno = 6 (0x6), region = 92 }
 0x1b4   :  { %1836 = vsyncpa [#allocation4], 1 }
 0x1b5   :  { %1838 = vsyncpa [#allocation4 + $0x1], 1 }
 0x1b6   :  { %1839 = vsyncpa [#allocation7], 1 }
 0x1b7   :  { %1840 = vsyncpa [#allocation5], 1 }
 0x1b8   :  { %1842 = vsyncpa [#allocation5 + $0x1], 1 }

</bundles_post_ra>
